<compile_context>
chip_gen: v5e
topology: v5e:2x2
jax: 0.10.0
libtpu: 0.0.40
codegen_flags: <defaults>
</compile_context>

<pallas_src>
import functools

import jax
import jax.numpy as jnp
from jax.experimental import pallas as pl
from jax.experimental.pallas import tpu as pltpu


def _round_up(x, m):
    return ((x + m - 1) // m) * m


# ----------------------------------------------------------------------------
# Fused Pallas kernel: halo'd slab -> 9-tap lifting conv (+ReLU) -> folded
# (spatial 1x1 . rot 1x1) (+ReLU). All weights VMEM-resident.
# ----------------------------------------------------------------------------
def _fused_psr_kernel(slab_ref, w1_ref, w23_ref, o_ref):
    # slab_ref: (1, th+2, W+2, Cp)  bf16  halo'd NHWC rows for this tile
    # w1_ref:   (9, Cp, N1p)        bf16  per-tap lifted filters (R rotations
    #                                     concatenated along the N1p lanes)
    # w23_ref:  (N1p, N3)           bf16  folded spatial-1x1 @ rot-1x1
    # o_ref:    (th*W, N3)          bf16
    th = slab_ref.shape[1] - 2
    w = slab_ref.shape[2] - 2
    cp = slab_ref.shape[3]
    n1p = w1_ref.shape[2]
    tm = o_ref.shape[0]                       # == th * w

    slab = slab_ref[0]                        # (th+2, W+2, Cp)

    # Stage 1: 3x3 lifting conv as 9 small dots over in-kernel taps.
    acc = jnp.zeros((tm, n1p), jnp.float32)
    for kh in range(3):
        for kw in range(3):
            tap = slab[kh:kh + th, kw:kw + w, :].reshape(tm, cp)
            acc = acc + jnp.dot(tap, w1_ref[kh * 3 + kw],
                                preferred_element_type=jnp.float32)
    h1 = jnp.maximum(acc, 0.0).astype(jnp.bfloat16)       # _SRConv internal ReLU

    # Stages 2+3 (folded, no activation in between) + final block ReLU.
    h3 = jnp.dot(h1, w23_ref[...], preferred_element_type=jnp.float32)
    o_ref[...] = jnp.maximum(h3, 0.0).astype(o_ref.dtype)


def fused_psr_conv(slabs, w1, w23, *, tile_rows):
    """slabs:(S, th+2, W+2, Cp) bf16, w1:(9,Cp,N1p) bf16, w23:(N1p,N3) bf16."""
    s, thp2, wp2, cp = slabs.shape
    n3 = w23.shape[1]
    m = s * tile_rows
    return pl.pallas_call(
        _fused_psr_kernel,
        out_shape=jax.ShapeDtypeStruct((m, n3), jnp.bfloat16),
        grid_spec=pltpu.PrefetchScalarGridSpec(
            num_scalar_prefetch=0,
            grid=(s,),
            in_specs=[
                pl.BlockSpec((1, thp2, wp2, cp), lambda i: (i, 0, 0, 0)),
                pl.BlockSpec(w1.shape, lambda i: (0, 0, 0)),    # resident
                pl.BlockSpec(w23.shape, lambda i: (0, 0)),      # resident
            ],
            out_specs=pl.BlockSpec((tile_rows, n3), lambda i: (i, 0)),
        ),
        compiler_params=pltpu.CompilerParams(
            dimension_semantics=("parallel",)),
    )(slabs, w1, w23)


# ----------------------------------------------------------------------------
# Row-tile chooser: >= 8 grid steps (both v7x TCs get several pipelined steps)
# with tile rows <= 512 (v7x 64 MiB VMEM safe; measured HBM-roofline sweet spot).
# ----------------------------------------------------------------------------
def _choose_th(batch, height, width, *, max_rows=512, min_steps=8):
    divisors = [d for d in range(1, height + 1) if height % d == 0]
    for need_steps in (min_steps, 2, 1):
        for d in sorted(divisors, reverse=True):
            rows = d * width
            if (rows <= max_rows and rows % 8 == 0
                    and batch * (height // d) >= need_steps):
                return d
    # TODO(synk): fallback assumes H*W rows form a legal block; fine for the
    # configs exercised here.
    return height


# ----------------------------------------------------------------------------
# One-time weight preprocessing (hoisted out of the jitted forward).
# ----------------------------------------------------------------------------
def prepare_weights(params, *, kernel_rot, num_kernel, out_channels,
                    dtype=jnp.bfloat16):
    R = kernel_rot
    w_sr = params["srconv_weight"]                     # (C1, C_in, 3, 3)
    C1, C_in = int(w_sr.shape[0]), int(w_sr.shape[1])
    assert C1 == out_channels * num_kernel
    Cp = _round_up(C_in, 8)
    N1 = R * C1
    N1p = _round_up(N1, 128)                           # lane-dense resident weight
    N3 = R * out_channels

    # W1[t, c, rot*C1 + o] = rot90(w_sr, rot)[o, c, kh, kw],  t = kh*3 + kw.
    # TODO(synk): rot90 direction is a stand-in for the unspecified _SRConv.
    w1 = jnp.zeros((9, Cp, N1p), jnp.float32)
    for rot in range(R):
        w_rot = jnp.rot90(w_sr, k=rot, axes=(2, 3))    # (C1, C_in, 3, 3)
        wt = jnp.transpose(w_rot, (2, 3, 1, 0)).reshape(9, C_in, C1)
        w1 = w1.at[:, :C_in, rot * C1:(rot + 1) * C1].set(wt)

    # W2: conv_spatial_1x1 shared across rotations -> block-diagonal.
    w_sp = jnp.transpose(params["spatial_1x1"][:, :, 0, 0, 0], (1, 0))  # (C1,C_out)
    w2 = jnp.kron(jnp.eye(R, dtype=w_sp.dtype), w_sp)  # (N1, N3)

    # W3: conv_rot_1x1 group conv over rotation -> block-cyclic.
    # W3[r*C + i, ro*C + o] = w_rt[o, i, (r - ro) % R]
    w_rt = params["rot_1x1"][:, :, :, 0, 0]            # (C_out, C_out, R)
    rows = []
    for r in range(R):
        rows.append(jnp.concatenate(
            [jnp.transpose(w_rt[:, :, (r - ro) % R], (1, 0)) for ro in range(R)],
            axis=1))
    w3 = jnp.concatenate(rows, axis=0)                 # (N3, N3)

    # Fold stages 2+3 in f32 (no activation between them), pad rows to N1p.
    w23 = jnp.zeros((N1p, N3), jnp.float32).at[:N1].set(w2 @ w3)

    return {"w1": w1.astype(dtype), "w23": w23.astype(dtype)}


# ----------------------------------------------------------------------------
# Forward (thin JAX glue around the single fused Pallas call)
# ----------------------------------------------------------------------------
def psr_conv_block(x_nchw, w1, w23, *, kernel_rot, out_channels):
    """x: (B, C_in, H, W) f32 -> (B, out_channels, kernel_rot, H, W) f32."""
    B, C_in, H, W = x_nchw.shape
    R = kernel_rot
    Cp = w1.shape[1]

    # NHWC bf16 with spatial halo padding and channel padding in one pad.
    x_nhwc = jnp.transpose(x_nchw, (0, 2, 3, 1)).astype(jnp.bfloat16)
    x_pad = jnp.pad(x_nhwc, ((0, 0), (1, 1), (1, 1), (0, Cp - C_in)))

    # Halo'd row slabs: slab (b, j) = padded rows [j*th, j*th + th + 2).
    th = _choose_th(B, H, W)
    nrt = H // th
    row_idx = jnp.arange(nrt)[:, None] * th + jnp.arange(th + 2)[None, :]
    slabs = x_pad[:, row_idx]                          # (B, nrt, th+2, W+2, Cp)
    slabs = slabs.reshape(B * nrt, th + 2, W + 2, Cp)

    out_flat = fused_psr_conv(slabs, w1, w23, tile_rows=th * W)  # (M, R*C_out) bf16

    out = out_flat.reshape(B, H, W, R, out_channels)
    # Module-mandated layout (B, C_out, R, H, W), back to f32 (fused with the
    # transpose pass).
    # TODO(synk): if downstream consumed channels-last bf16, this pass could go.
    return jnp.transpose(out, (0, 4, 3, 1, 2)).astype(jnp.float32)


# ----------------------------------------------------------------------------
# Pure-jnp reference (mirrors the original per-stage / per-rotation structure).
# ----------------------------------------------------------------------------
def reference_forward(x_nchw, params, *, kernel_rot, num_kernel, out_channels):
    B, C_in, H, W = x_nchw.shape
    R = kernel_rot
    C1 = out_channels * num_kernel
    bf = lambda a: a.astype(jnp.bfloat16).astype(jnp.float32)

    x_nhwc = jnp.transpose(bf(x_nchw), (0, 2, 3, 1))
    x_pad = jnp.pad(x_nhwc, ((0, 0), (1, 1), (1, 1), (0, 0)))
    taps = [x_pad[:, kh:kh + H, kw:kw + W, :]
            for kh in range(3) for kw in range(3)]
    patches = jnp.stack(taps, axis=3).reshape(B * H * W, 9 * C_in)

    w_sr = bf(params["srconv_weight"])
    ys = []
    for rot in range(R):
        w_rot = jnp.rot90(w_sr, k=rot, axes=(2, 3))
        w_mat = jnp.transpose(w_rot, (2, 3, 1, 0)).reshape(9 * C_in, C1)
        ys.append(bf(jax.nn.relu(patches @ w_mat)))
    y = jnp.stack(ys, axis=0)                                   # (R, M, C1)

    w_sp = bf(jnp.transpose(params["spatial_1x1"][:, :, 0, 0, 0], (1, 0)))
    y2 = jnp.einsum('rmc,co->rmo', y, w_sp)                     # (R, M, C_out)

    w_rt = bf(params["rot_1x1"][:, :, :, 0, 0])                 # (C_out, C_out, R)
    outs = []
    for rot in range(R):
        idx = [(r - rot) % R for r in range(R)]
        outs.append(jax.nn.relu(jnp.einsum('rmi,oir->mo', y2, w_rt[:, :, idx])))
    out = jnp.stack(outs, axis=0).reshape(R, B, H, W, out_channels)
    return jnp.transpose(out, (1, 4, 0, 2, 3))


# ----------------------------------------------------------------------------
# Deterministic parameter construction (kaiming / msra style scaling, no bias).
# ----------------------------------------------------------------------------
def make_params(key, in_channels, out_channels, num_kernel, kernel_rot):
    k1, k2, k3 = jax.random.split(key, 3)
    C1 = out_channels * num_kernel

    sr_shape = (C1, in_channels, 3, 3)
    sr_std = (2.0 / (sr_shape[0] * 3 * 3)) ** 0.5
    srconv_weight = jax.random.normal(k1, sr_shape, jnp.float32) * sr_std

    sp_shape = (out_channels, C1, 1, 1, 1)
    sp_std = (2.0 / out_channels) ** 0.5
    spatial_1x1 = jax.random.normal(k2, sp_shape, jnp.float32) * sp_std

    rt_shape = (out_channels, out_channels, kernel_rot, 1, 1)
    rt_std = (2.0 / (out_channels * kernel_rot)) ** 0.5
    rot_1x1 = jax.random.normal(k3, rt_shape, jnp.float32) * rt_std

    return {"srconv_weight": srconv_weight,
            "spatial_1x1": spatial_1x1,
            "rot_1x1": rot_1x1}


if __name__ == "__main__":
    # small config: batch=2, in_channels=4, out_channels=8, H=W=16,
    # kernel_rot=4, num_kernel=2, noise_var=0, norm=None, rot_1x1_out=True
    B, C_IN, H, W = 2, 4, 16, 16
    OUT_CH, NUM_KERNEL, KERNEL_ROT = 8, 2, 4

    key = jax.random.PRNGKey(0)
    kx, kp = jax.random.split(key)
    x = jax.random.normal(kx, (B, C_IN, H, W), jnp.float32)
    params = make_params(kp, C_IN, OUT_CH, NUM_KERNEL, KERNEL_ROT)

    # One-time, out-of-jit weight preprocessing -> matmul-ready bf16 matrices.
    w = prepare_weights(params, kernel_rot=KERNEL_ROT, num_kernel=NUM_KERNEL,
                        out_channels=OUT_CH)

    fwd = jax.jit(functools.partial(
        psr_conv_block, kernel_rot=KERNEL_ROT, out_channels=OUT_CH))
    out = fwd(x, w["w1"], w["w23"])
    out = jax.block_until_ready(out)

    assert out.shape == (B, OUT_CH, KERNEL_ROT, H, W), out.shape
    assert out.dtype == jnp.float32
    assert bool(jnp.all(jnp.isfinite(out)))
    assert bool(jnp.all(out >= 0.0))  # final ReLU

    # Numerical check against the unfused per-rotation reference (bf16 weights /
    # activations, kernel additionally folds w2@w3 and emits bf16 -> loose tol).
    ref = reference_forward(x, params, kernel_rot=KERNEL_ROT,
                            num_kernel=NUM_KERNEL, out_channels=OUT_CH)
    max_err = float(jnp.max(jnp.abs(out - ref)))
    assert max_err < 5e-2, max_err

    print("KERNEL_OK")
</pallas_src>

<mosaic_0001>
module attributes {stable_mosaic.version = 11 : i64} {
  func.func @_fused_psr_kernel(%arg0: i32, %arg1: memref<1x6x18x8xbf16, #tpu.memory_space<vmem>>, %arg2: memref<9x8x128xbf16, #tpu.memory_space<vmem>>, %arg3: memref<128x32xbf16, #tpu.memory_space<vmem>>, %arg4: memref<64x32xbf16, #tpu.memory_space<vmem>>) attributes {dimension_semantics = [#tpu.dimension_semantics<parallel>], iteration_bounds = array<i64: 8>, scalar_prefetch = 0 : i64, scratch_operands = 0 : i64, tpu.core_type = #tpu.core_type<tc>, window_params = [{transform_indices = @transform_0, window_bounds = array<i64: 1, 6, 18, 8>}, {pipeline_mode = #tpu.pipeline_mode<synchronous>, transform_indices = @transform_1, window_bounds = array<i64: 9, 8, 128>}, {pipeline_mode = #tpu.pipeline_mode<synchronous>, transform_indices = @transform_2, window_bounds = array<i64: 128, 32>}, {transform_indices = @transform_3, window_bounds = array<i64: 64, 32>}]} {
    %c0 = arith.constant 0 : index
    %c0_0 = arith.constant 0 : index
    %c0_1 = arith.constant 0 : index
    %c0_2 = arith.constant 0 : index
    %0 = vector.load %arg1[%c0, %c0_0, %c0_1, %c0_2] : memref<1x6x18x8xbf16, #tpu.memory_space<vmem>>, vector<1x6x18x8xbf16>
    %1 = vector.shape_cast %0 : vector<1x6x18x8xbf16> to vector<6x18x8xbf16>
    %cst = arith.constant 0.000000e+00 : f32
    %2 = vector.broadcast %cst : f32 to vector<64x128xf32>
    %3 = vector.extract_strided_slice %1 {offsets = [0, 0, 0], sizes = [4, 16, 8], strides = [1, 1, 1]} : vector<6x18x8xbf16> to vector<4x16x8xbf16>
    %4 = vector.shape_cast %3 : vector<4x16x8xbf16> to vector<64x8xbf16>
    %c0_3 = arith.constant 0 : index
    %c0_4 = arith.constant 0 : index
    %c0_5 = arith.constant 0 : index
    %5 = vector.load %arg2[%c0_3, %c0_4, %c0_5] : memref<9x8x128xbf16, #tpu.memory_space<vmem>>, vector<1x8x128xbf16>
    %6 = vector.shape_cast %5 : vector<1x8x128xbf16> to vector<8x128xbf16>
    %cst_6 = arith.constant dense<0.000000e+00> : vector<64x128xf32>
    %7 = tpu.matmul %4, %6, %cst_6 {dimension_numbers = #tpu.dot_dimension_numbers<[1], [0], [0], [1], [0, 0, 1, 1], [], []>} : vector<64x8xbf16>, vector<8x128xbf16>, vector<64x128xf32> -> vector<64x128xf32>
    %8 = arith.addf %2, %7 : vector<64x128xf32>
    %9 = vector.extract_strided_slice %1 {offsets = [0, 1, 0], sizes = [4, 16, 8], strides = [1, 1, 1]} : vector<6x18x8xbf16> to vector<4x16x8xbf16>
    %10 = vector.shape_cast %9 : vector<4x16x8xbf16> to vector<64x8xbf16>
    %c1 = arith.constant 1 : index
    %c0_7 = arith.constant 0 : index
    %c0_8 = arith.constant 0 : index
    %11 = vector.load %arg2[%c1, %c0_7, %c0_8] : memref<9x8x128xbf16, #tpu.memory_space<vmem>>, vector<1x8x128xbf16>
    %12 = vector.shape_cast %11 : vector<1x8x128xbf16> to vector<8x128xbf16>
    %cst_9 = arith.constant dense<0.000000e+00> : vector<64x128xf32>
    %13 = tpu.matmul %10, %12, %cst_9 {dimension_numbers = #tpu.dot_dimension_numbers<[1], [0], [0], [1], [0, 0, 1, 1], [], []>} : vector<64x8xbf16>, vector<8x128xbf16>, vector<64x128xf32> -> vector<64x128xf32>
    %14 = arith.addf %8, %13 : vector<64x128xf32>
    %15 = vector.extract_strided_slice %1 {offsets = [0, 2, 0], sizes = [4, 16, 8], strides = [1, 1, 1]} : vector<6x18x8xbf16> to vector<4x16x8xbf16>
    %16 = vector.shape_cast %15 : vector<4x16x8xbf16> to vector<64x8xbf16>
    %c2 = arith.constant 2 : index
    %c0_10 = arith.constant 0 : index
    %c0_11 = arith.constant 0 : index
    %17 = vector.load %arg2[%c2, %c0_10, %c0_11] : memref<9x8x128xbf16, #tpu.memory_space<vmem>>, vector<1x8x128xbf16>
    %18 = vector.shape_cast %17 : vector<1x8x128xbf16> to vector<8x128xbf16>
    %cst_12 = arith.constant dense<0.000000e+00> : vector<64x128xf32>
    %19 = tpu.matmul %16, %18, %cst_12 {dimension_numbers = #tpu.dot_dimension_numbers<[1], [0], [0], [1], [0, 0, 1, 1], [], []>} : vector<64x8xbf16>, vector<8x128xbf16>, vector<64x128xf32> -> vector<64x128xf32>
    %20 = arith.addf %14, %19 : vector<64x128xf32>
    %21 = vector.extract_strided_slice %1 {offsets = [1, 0, 0], sizes = [4, 16, 8], strides = [1, 1, 1]} : vector<6x18x8xbf16> to vector<4x16x8xbf16>
    %22 = vector.shape_cast %21 : vector<4x16x8xbf16> to vector<64x8xbf16>
    %c3 = arith.constant 3 : index
    %c0_13 = arith.constant 0 : index
    %c0_14 = arith.constant 0 : index
    %23 = vector.load %arg2[%c3, %c0_13, %c0_14] : memref<9x8x128xbf16, #tpu.memory_space<vmem>>, vector<1x8x128xbf16>
    %24 = vector.shape_cast %23 : vector<1x8x128xbf16> to vector<8x128xbf16>
    %cst_15 = arith.constant dense<0.000000e+00> : vector<64x128xf32>
    %25 = tpu.matmul %22, %24, %cst_15 {dimension_numbers = #tpu.dot_dimension_numbers<[1], [0], [0], [1], [0, 0, 1, 1], [], []>} : vector<64x8xbf16>, vector<8x128xbf16>, vector<64x128xf32> -> vector<64x128xf32>
    %26 = arith.addf %20, %25 : vector<64x128xf32>
    %27 = vector.extract_strided_slice %1 {offsets = [1, 1, 0], sizes = [4, 16, 8], strides = [1, 1, 1]} : vector<6x18x8xbf16> to vector<4x16x8xbf16>
    %28 = vector.shape_cast %27 : vector<4x16x8xbf16> to vector<64x8xbf16>
    %c4 = arith.constant 4 : index
    %c0_16 = arith.constant 0 : index
    %c0_17 = arith.constant 0 : index
    %29 = vector.load %arg2[%c4, %c0_16, %c0_17] : memref<9x8x128xbf16, #tpu.memory_space<vmem>>, vector<1x8x128xbf16>
    %30 = vector.shape_cast %29 : vector<1x8x128xbf16> to vector<8x128xbf16>
    %cst_18 = arith.constant dense<0.000000e+00> : vector<64x128xf32>
    %31 = tpu.matmul %28, %30, %cst_18 {dimension_numbers = #tpu.dot_dimension_numbers<[1], [0], [0], [1], [0, 0, 1, 1], [], []>} : vector<64x8xbf16>, vector<8x128xbf16>, vector<64x128xf32> -> vector<64x128xf32>
    %32 = arith.addf %26, %31 : vector<64x128xf32>
    %33 = vector.extract_strided_slice %1 {offsets = [1, 2, 0], sizes = [4, 16, 8], strides = [1, 1, 1]} : vector<6x18x8xbf16> to vector<4x16x8xbf16>
    %34 = vector.shape_cast %33 : vector<4x16x8xbf16> to vector<64x8xbf16>
    %c5 = arith.constant 5 : index
    %c0_19 = arith.constant 0 : index
    %c0_20 = arith.constant 0 : index
    %35 = vector.load %arg2[%c5, %c0_19, %c0_20] : memref<9x8x128xbf16, #tpu.memory_space<vmem>>, vector<1x8x128xbf16>
    %36 = vector.shape_cast %35 : vector<1x8x128xbf16> to vector<8x128xbf16>
    %cst_21 = arith.constant dense<0.000000e+00> : vector<64x128xf32>
    %37 = tpu.matmul %34, %36, %cst_21 {dimension_numbers = #tpu.dot_dimension_numbers<[1], [0], [0], [1], [0, 0, 1, 1], [], []>} : vector<64x8xbf16>, vector<8x128xbf16>, vector<64x128xf32> -> vector<64x128xf32>
    %38 = arith.addf %32, %37 : vector<64x128xf32>
    %39 = vector.extract_strided_slice %1 {offsets = [2, 0, 0], sizes = [4, 16, 8], strides = [1, 1, 1]} : vector<6x18x8xbf16> to vector<4x16x8xbf16>
    %40 = vector.shape_cast %39 : vector<4x16x8xbf16> to vector<64x8xbf16>
    %c6 = arith.constant 6 : index
    %c0_22 = arith.constant 0 : index
    %c0_23 = arith.constant 0 : index
    %41 = vector.load %arg2[%c6, %c0_22, %c0_23] : memref<9x8x128xbf16, #tpu.memory_space<vmem>>, vector<1x8x128xbf16>
    %42 = vector.shape_cast %41 : vector<1x8x128xbf16> to vector<8x128xbf16>
    %cst_24 = arith.constant dense<0.000000e+00> : vector<64x128xf32>
    %43 = tpu.matmul %40, %42, %cst_24 {dimension_numbers = #tpu.dot_dimension_numbers<[1], [0], [0], [1], [0, 0, 1, 1], [], []>} : vector<64x8xbf16>, vector<8x128xbf16>, vector<64x128xf32> -> vector<64x128xf32>
    %44 = arith.addf %38, %43 : vector<64x128xf32>
    %45 = vector.extract_strided_slice %1 {offsets = [2, 1, 0], sizes = [4, 16, 8], strides = [1, 1, 1]} : vector<6x18x8xbf16> to vector<4x16x8xbf16>
    %46 = vector.shape_cast %45 : vector<4x16x8xbf16> to vector<64x8xbf16>
    %c7 = arith.constant 7 : index
    %c0_25 = arith.constant 0 : index
    %c0_26 = arith.constant 0 : index
    %47 = vector.load %arg2[%c7, %c0_25, %c0_26] : memref<9x8x128xbf16, #tpu.memory_space<vmem>>, vector<1x8x128xbf16>
    %48 = vector.shape_cast %47 : vector<1x8x128xbf16> to vector<8x128xbf16>
    %cst_27 = arith.constant dense<0.000000e+00> : vector<64x128xf32>
    %49 = tpu.matmul %46, %48, %cst_27 {dimension_numbers = #tpu.dot_dimension_numbers<[1], [0], [0], [1], [0, 0, 1, 1], [], []>} : vector<64x8xbf16>, vector<8x128xbf16>, vector<64x128xf32> -> vector<64x128xf32>
    %50 = arith.addf %44, %49 : vector<64x128xf32>
    %51 = vector.extract_strided_slice %1 {offsets = [2, 2, 0], sizes = [4, 16, 8], strides = [1, 1, 1]} : vector<6x18x8xbf16> to vector<4x16x8xbf16>
    %52 = vector.shape_cast %51 : vector<4x16x8xbf16> to vector<64x8xbf16>
    %c8 = arith.constant 8 : index
    %c0_28 = arith.constant 0 : index
    %c0_29 = arith.constant 0 : index
    %53 = vector.load %arg2[%c8, %c0_28, %c0_29] : memref<9x8x128xbf16, #tpu.memory_space<vmem>>, vector<1x8x128xbf16>
    %54 = vector.shape_cast %53 : vector<1x8x128xbf16> to vector<8x128xbf16>
    %cst_30 = arith.constant dense<0.000000e+00> : vector<64x128xf32>
    %55 = tpu.matmul %52, %54, %cst_30 {dimension_numbers = #tpu.dot_dimension_numbers<[1], [0], [0], [1], [0, 0, 1, 1], [], []>} : vector<64x8xbf16>, vector<8x128xbf16>, vector<64x128xf32> -> vector<64x128xf32>
    %56 = arith.addf %50, %55 : vector<64x128xf32>
    %cst_31 = arith.constant 0.000000e+00 : f32
    %57 = vector.broadcast %cst_31 : f32 to vector<64x128xf32>
    %58 = arith.maximumf %56, %57 : vector<64x128xf32>
    %59 = arith.truncf %58 : vector<64x128xf32> to vector<64x128xbf16>
    %c0_32 = arith.constant 0 : index
    %c0_33 = arith.constant 0 : index
    %60 = vector.load %arg3[%c0_32, %c0_33] : memref<128x32xbf16, #tpu.memory_space<vmem>>, vector<128x32xbf16>
    %cst_34 = arith.constant dense<0.000000e+00> : vector<64x32xf32>
    %61 = tpu.matmul %59, %60, %cst_34 {dimension_numbers = #tpu.dot_dimension_numbers<[1], [0], [0], [1], [0, 0, 1, 1], [], []>} : vector<64x128xbf16>, vector<128x32xbf16>, vector<64x32xf32> -> vector<64x32xf32>
    %cst_35 = arith.constant 0.000000e+00 : f32
    %62 = vector.broadcast %cst_35 : f32 to vector<64x32xf32>
    %63 = arith.maximumf %61, %62 : vector<64x32xf32>
    %64 = arith.truncf %63 : vector<64x32xf32> to vector<64x32xbf16>
    %c0_36 = arith.constant 0 : index
    %c0_37 = arith.constant 0 : index
    %65 = vector.load %arg4[%c0_36, %c0_37] : memref<64x32xbf16, #tpu.memory_space<vmem>>, vector<64x32xbf16>
    tpu.vector_store %arg4[%c0_36, %c0_37], %64 {strides = array<i32>} : memref<64x32xbf16, #tpu.memory_space<vmem>>, vector<64x32xbf16>,
    return
  }
  func.func @transform_0(%arg0: i32) -> (i32, i32, i32, i32) {
    %c0_i32 = arith.constant 0 : i32
    %c0_i32_0 = arith.constant 0 : i32
    %c0_i32_1 = arith.constant 0 : i32
    %c0_i32_2 = arith.constant 0 : i32
    return %arg0, %c0_i32, %c0_i32_0, %c0_i32_1 : i32, i32, i32, i32
  }
  func.func @transform_1(%arg0: i32) -> (i32, i32, i32) {
    %c0_i32 = arith.constant 0 : i32
    %c0_i32_0 = arith.constant 0 : i32
    %c0_i32_1 = arith.constant 0 : i32
    %c0_i32_2 = arith.constant 0 : i32
    return %c0_i32, %c0_i32_0, %c0_i32_1 : i32, i32, i32
  }
  func.func @transform_2(%arg0: i32) -> (i32, i32) {
    %c0_i32 = arith.constant 0 : i32
    %c0_i32_0 = arith.constant 0 : i32
    %c0_i32_1 = arith.constant 0 : i32
    return %c0_i32, %c0_i32_0 : i32, i32
  }
  func.func @transform_3(%arg0: i32) -> (i32, i32) {
    %c0_i32 = arith.constant 0 : i32
    %c0_i32_0 = arith.constant 0 : i32
    return %arg0, %c0_i32 : i32, i32
  }
}

</mosaic_0001>

<bundles_post_ra>
// kernel: psr_conv_block.1
= control target key start
LH: loop header
LB: loop body
LE: loop exit
PB: predicated region body
PF: predicated region fallthrough
CT: control target
= control target key end

     0   :  { %s1227_s12 = smov 0   ;;  %s1555_s0 = inlined_call_operand.vmem [shape: bf16[8,6,18,8], index: 0, kind: input, shape index: {}]   ;;  %s1556_s1 = inlined_call_operand.vmem [shape: bf16[9,8,128], index: 1, kind: input, shape index: {}]   ;;  %s1557_s2 = inlined_call_operand.vmem [shape: bf16[128,32], index: 2, kind: input, shape index: {}]   ;;  %s1558_s3 = inlined_call_operand.vmem [shape: bf16[512,32], index: 3, kind: output, shape index: {}]  }
   0x1 LB: > { %s1233_s13 = sadd.s32 4294967295, %s1205_s12   ;;  %p1062_p0 = scmp.ge.s32.totalorder %s1205_s12, 1  ;;  %s1205_s12 = sphi %s1227_s12, %s13_s12  }
   0x2   : > { %p137_p1 = scmp.lt.s32.totalorder %s1205_s12, 9 }
   0x4   : > { %p138_p2 = pnand %p1062_p0, %p137_p1 }
   0x5   : > { %p161_p3 = scmp.lt.s32.totalorder (!%p138_p2), %s1233_s13, 7 }
   0x6   : > { %141 = sbr.rel (%p138_p2) target bundleno = 464 (0x1d0), region = 32 }
   0xb   : > { %v191_v0 = vld [vmem:[%s1556_s1] sm:$0xf]  ;;  %vm318_vm0 = vcmask 1043456   ;;  %v1066_v2 = vld [vmem:[%s1556_s1 + $0x4] sm:$0xf]  ;;  %s162_s18 = scalar_select %p161_p3, %s1233_s13, 7 }
   0xc   : > { %v384_v1 = vsel %vm318_vm0, %v191_v0, 0  ;;  %v320_v3 = vsel %vm318_vm0, %v1066_v2, 0  ;;  %v1095_v4 = vld [vmem:[%s1556_s1 + $0x8] sm:$0xf]  ;;  %v1100_v6 = vld [vmem:[%s1556_s1 + $0xc] sm:$0xf] }
   0xd   : > { %1189 = vmatpush.bf16.msra.mxu3 %v384_v1  ;;  %393 = vmatpush.bf16.msra.mxu1 %v384_v1  ;;  %v477_v5 = vsel %vm318_vm0, %v1095_v4, 0  ;;  %v1109_v7 = vld [vmem:[%s1556_s1 + $0x10] sm:$0xf]  ;;  %s1190_s25 = smul.u32 72, %s162_s18  ;;  %v527_v8 = vsel %vm318_vm0, %v1100_v6, 0  ;;  %vm305_vm1 = vcmask 64512  }
   0xe   : > { %1188 = vmatpush.bf16.msra.mxu2 %v320_v3  ;;  %329 = vmatpush.bf16.msra.mxu0 %v320_v3  ;;  %v599_v9 = vsel %vm318_vm0, %v1109_v7, 0  ;;  %vm192_vm2 = vsmask.f32 3328  ;;  %vm193_vm3 = vsmask.f32 7440  ;;  %vm419_vm5 = vcmask 1042432  }
   0xf   : > { %s1262_s28 = scalar_lea.vmem %s1555_s0, %s1190_s25  ;;  %vm1307_vm4 = vmor %vm192_vm2, %vm193_vm3  ;;  %vm420_vm6 = vcmask 1046532   ;;  %vm993_vm8 = vcmask 257024  }
  0x10   : > { %v1265_v10 = vld [vmem:[%s1262_s28 + $0x18] sm:$0xff]  ;;  %v1274_v13 = vld [vmem:[%s1262_s28 + $0x20] sm:$0x1]  ;;  %v1287_v20 = vld [vmem:[%s1262_s28 + $0x4] sm:$0xf] }
  0x11   : > { %536 = vmatpush.bf16.msrb.mxu3 %v527_v8  ;;  %v1268_v11 = vld [vmem:[%s1262_s28 + $0x18] sm:$0xf]  ;;  %v1271_v12 = vld [vmem:[%s1262_s28 + $0x1c] sm:$0xf]  ;;  %v263_v18 = vshll.u32 %v1274_v13, 16  ;;  %v1174_v21 = vld [vmem:[%s1262_s28] sm:$0xff] }
  0x12   : > { %486 = vmatpush.bf16.msrb.mxu2 %v477_v5  ;;  %608 = vmatpush.bf16.msrb.mxu0 %v599_v9  ;;  %v244_v14 = vshrl.u32 %v1268_v11, 16  ;;  %v247_v15 = vshll.u32 %v1268_v11, 16  ;;  %v253_v16 = vshll.u32 %v1271_v12, 16  ;;  %v257_v17 = vshrl.u32 %v1271_v12, 16  ;;  %v1284_v19 = vld [vmem:[%s1262_s28] sm:$0xf]  ;;  %vm1373_vm7 = vmor %vm419_vm5, %vm420_vm6 }
  0x13   : > { %1089 = vmatmul.msk.bf16.vlgmr.msra.gmra.mxu3 %vm305_vm1, %v1265_v10  ;;  %v1291_v26 = vld [vmem:[%s1262_s28 + $0x8] sm:$0x1]  ;;  %v265_v27 = vrot.slane %v263_v18, 5  ;;  %v196_v28 = vshrl.u32 %v1284_v19, 16  ;;  %v199_v29 = vshll.u32 %v1284_v19, 16  ;;  %v205_v30 = vshll.u32 %v1287_v20, 16  ;;  %1087 = vmatmul.msk.bf16.vlgmr.msra.gmra.mxu1 %vm305_vm1, %v1174_v21 }
  0x14   : > { %v246_v22 = vrot.slane %v244_v14, 4  ;;  %v249_v23 = vrot.slane %v247_v15, 5  ;;  %v255_v24 = vrot.slane %v253_v16, 5  ;;  %v259_v25 = vrot.slane %v257_v17, 4  ;;  %v1300_v35 = vld [vmem:[%s1262_s28 + $0x24] sm:$0xf] }
  0x15   : > { %v209_v33 = vshrl.u32 %v1287_v20, 16  ;;  %v215_v34 = vshll.u32 %v1291_v26, 16  ;;  %v1303_v36 = vld [vmem:[%s1262_s28 + $0x28] sm:$0xf]  ;;  %v198_v38 = vrot.slane %v196_v28, 4  ;;  %v201_v39 = vrot.slane %v199_v29, 5 }
  0x16   : > { %v250_v31 = vor.u32 %v249_v23, %v246_v22  ;;  %v260_v32 = vor.u32 %v259_v25, %v255_v24  ;;  %v207_v40 = vrot.slane %v205_v30, 5  ;;  %v268_v46 = vshrl.u32 %v1300_v35, 16  ;;  %v1319_v52 = vld [vmem:[%s1262_s28 + $0x2c] sm:$0x1]  ;;  %v177_v2 = vld [vmem:[%s1262_s28 + $0x10] sm:$0xf] }
  0x17   : > { %v211_v43 = vrot.slane %v209_v33, 4  ;;  %v217_v44 = vrot.slane %v215_v34, 5  ;;  %v202_v45 = vor.u32 %v201_v39, %v198_v38  ;;  %v271_v47 = vshll.u32 %v1300_v35, 16  ;;  %v1323_v54 = vld [vmem:[%s1262_s28 + $0xc] sm:$0xf]  ;;  %v1338_v14 = vld [vmem:[%s1262_s28 + $0x24] sm:$0xff] }
  0x18   : > { %v251_v41 = vrot.slane %v250_v31, 4  ;;  %v261_v42 = vrot.slane %v260_v32, 4  ;;  %v277_v48 = vshll.u32 %v1303_v36, 16  ;;  %v281_v53 = vshrl.u32 %v1303_v36, 16  ;;  %v178_v8 = vld [vmem:[%s1262_s28 + $0x14] sm:$0x1] }
  0x19   : > { %v212_v51 = vor.u32 %v211_v43, %v207_v40  ;;  %v203_v57 = vrot.slane %v202_v45, 4  ;;  %v270_v58 = vrot.slane %v268_v46, 4  ;;  %v273_v60 = vrot.slane %v271_v47, 5  ;;  %v1175_v28 = vld [vmem:[%s1262_s28 + $0xc] sm:$0xff]  ;;  %v1120_v31 = vld [vmem:[%s1556_s1 + $0x18] sm:$0xf] }
  0x1a   : > { %v256_v49 = vsel %vm1307_vm4, %v251_v41, %v255_v24  ;;  %v266_v50 = vsel %vm1307_vm4, %v261_v42, %v265_v27  ;;  %v279_v61 = vrot.slane %v277_v48, 5  ;;  %v283_v62 = vrot.slane %v281_v53, 4  ;;  %v1129_v33 = vld [vmem:[%s1556_s1 + $0x1c] sm:$0xf]  ;;  %v1115_v34 = vld [vmem:[%s1556_s1 + $0x14] sm:$0xf] }
  0x1b   : > { %v297_v55 = vunpack.c.l.b16 %v256_v49  ;;  %v298_v56 = vunpack.c.l.b16 %v266_v50  ;;  %v213_v59 = vrot.slane %v212_v51, 4  ;;  %v208_v0 = vsel %vm1307_vm4, %v203_v57, %v207_v40  ;;  %v1135_v42 = vld [vmem:[%s1556_s1 + $0x20] sm:$0xf] }
  0x1c   : > { %v287_v1 = vshll.u32 %v1319_v52, 16  ;;  %v220_v3 = vshrl.u32 %v1323_v54, 16  ;;  %v293_v5 = vunpack.c.l.b16 %v208_v0  ;;  %v274_v6 = vor.u32 %v273_v60, %v270_v58  ;;  %v1187_v58 = vld [vmem:[%s1557_s2 + $0x38] sm:$0xff] }
  0x1d   : > { %v1325_v63 = vpack.c.b16 %v298_v56, %v297_v55  ;;  %v218_v4 = vsel %vm1307_vm4, %v213_v59, %v217_v44  ;;  %v284_v7 = vor.u32 %v283_v62, %v279_v61  ;;  %v223_v17 = vshll.u32 %v1323_v54, 16 }
  0x1e   : > { %v294_v9 = vunpack.c.l.b16 %v218_v4  ;;  %v289_v15 = vrot.slane %v287_v1, 5  ;;  %v222_v16 = vrot.slane %v220_v3, 4  ;;  %v275_v18 = vrot.slane %v274_v6, 4 }
  0x1f   : > { %1069 = vmatmul.msk.bf16.vlgmr.msra.gmra.mxu2 %vm305_vm1, %v1325_v63  ;;  %v285_v21 = vrot.slane %v284_v7, 4  ;;  %v229_v22 = vshll.u32 %v177_v2, 16  ;;  %v233_v23 = vshrl.u32 %v177_v2, 16  ;;  %v225_v25 = vrot.slane %v223_v17, 5 }
  0x20   : > { %v301_v24 = vpack.c.b16 %v294_v9, %v293_v5  ;;  %v239_v27 = vshll.u32 %v178_v8, 16  ;;  %v280_v38 = vsel %vm1307_vm4, %v275_v18, %v279_v61  ;;  %v705_v44 = vsel %vm318_vm0, %v1120_v31, 0 }
  0x21   : > { %v231_v29 = vrot.slane %v229_v22, 5  ;;  %v235_v30 = vrot.slane %v233_v23, 4  ;;  %v226_v32 = vor.u32 %v225_v25, %v222_v16  ;;  %v290_v39 = vsel %vm1307_vm4, %v285_v21, %v289_v15  ;;  %714 = vmatpush.bf16.msra.mxu2 %v705_v44 }
  0x22   : > { %1067 = vmatmul.msk.bf16.vlgmr.msra.gmra.mxu0 %vm305_vm1, %v301_v24  ;;  %v241_v41 = vrot.slane %v239_v27, 5  ;;  %v777_v46 = vsel %vm318_vm0, %v1129_v33, 0  ;;  %v655_v47 = vsel %vm318_vm0, %v1115_v34, 0  ;;  %v833_v48 = vsel %vm318_vm0, %v1135_v42, 0  ;;  %v186_v33 = vld [vmem:[%s1262_s28 + $0x34] sm:$0xf] }
  0x23   : > { %1090 = vmatmul.msk.bf16.gmra.mxu3 %vm305_vm1, %v1338_v14  ;;  %v236_v40 = vor.u32 %v235_v30, %v231_v29  ;;  %v227_v43 = vrot.slane %v226_v32, 4  ;;  %1088 = vmatmul.msk.bf16.gmra.mxu1 %vm305_vm1, %v1175_v28  ;;  %v299_v49 = vunpack.c.l.b16 %v280_v38  ;;  %v300_v50 = vunpack.c.l.b16 %v290_v39  ;;  %v187_v34 = vld [vmem:[%s1262_s28 + $0x38] sm:$0x1] }
  0x24   : > { %786 = vmatpush.bf16.msra.mxu3 %v777_v46  ;;  %664 = vmatpush.bf16.msrb.mxu1 %v655_v47  ;;  %v1092_v51 = vrot.slane %v1323_v54, 9  ;;  %v434_v56 = vrot.slane %v178_v8, 5  ;;  %v431_v57 = vrot.slane %v177_v2, 5  ;;  %v424_v0 = vrot.slane %v1287_v20, 5 }
  0x25   : > { %v237_v45 = vrot.slane %v236_v40, 4  ;;  %v232_v53 = vsel %vm1307_vm4, %v227_v43, %v231_v29  ;;  %842 = vmatpush.bf16.msra.mxu0 %v833_v48  ;;  %v1379_v54 = vpack.c.b16 %v300_v50, %v299_v49  ;;  %v427_v5 = vrot.slane %v1291_v26, 5 }
  0x26   : > { %v432_v59 = vsel %vm1373_vm7, %v1092_v51, %v431_v57  ;;  %v433_v60 = vrot.slane %v431_v57, 4  ;;  %v295_v61 = vunpack.c.l.b16 %v232_v53  ;;  %v1091_v6 = vrot.slane %v1284_v19, 9 }
  0x27   : > { %v242_v55 = vsel %vm1307_vm4, %v237_v45, %v241_v41  ;;  %v454_v2 = vunpack.c.l.b16 %v432_v59  ;;  %v426_v7 = vrot.slane %v424_v0, 4  ;;  %v438_v20 = vrot.slane %v1271_v12, 5 }
  0x28   : > { %v296_v62 = vunpack.c.l.b16 %v242_v55  ;;  %v435_v1 = vsel %vm1373_vm7, %v433_v60, %v434_v56  ;;  %v425_v9 = vsel %vm1373_vm7, %v1091_v6, %v424_v0  ;;  %v1093_v26 = vrot.slane %v1268_v11, 9  ;;  %v1178_v55 = vld [vmem:[%s1262_s28 + $0x30] sm:$0xff]  ;;  %v188_v6 = vld [vmem:[%s1262_s28 + $0x3c] sm:$0xf]  ;;  %948 = vmatpush.bf16.msra.mxu1 %v1187_v58 }
  0x29   : > { %v455_v3 = vunpack.c.l.b16 %v435_v1  ;;  %v428_v15 = vsel %vm1373_vm7, %v426_v7, %v427_v5  ;;  %v440_v16 = vrot.slane %v438_v20, 4  ;;  %v441_v19 = vrot.slane %v1274_v13, 5  ;;  %v189_v7 = vld [vmem:[%s1262_s28 + $0x40] sm:$0xf] }
  0x2a   : > { %v302_v4 = vpack.c.b16 %v296_v62, %v295_v61  ;;  %v452_v17 = vunpack.c.l.b16 %v425_v9  ;;  %v453_v18 = vunpack.c.l.b16 %v428_v15  ;;  %v439_v21 = vsel %vm1373_vm7, %v1093_v26, %v438_v20 }
  0x2b   : > { %v461_v8 = vpack.c.b16 %v455_v3, %v454_v2  ;;  %v442_v12 = vsel %vm1373_vm7, %v440_v16, %v441_v19  ;;  %v456_v23 = vunpack.c.l.b16 %v439_v21  ;;  %v445_v11 = vrot.slane %v1303_v36, 5 }
  0x2c   : > { %v460_v22 = vpack.c.b16 %v453_v18, %v452_v17  ;;  %v457_v24 = vunpack.c.l.b16 %v442_v12  ;;  %v1094_v13 = vrot.slane %v1300_v35, 9  ;;  %v641_v35 = vrot.slane %v186_v33, 5  ;;  %v190_v18 = vld [vmem:[%s1262_s28 + $0x44] sm:$0x1] }
  0x2d   : > { %v447_v27 = vrot.slane %v445_v11, 4  ;;  %v644_v40 = vrot.slane %v187_v34, 5  ;;  %v576_v43 = vshll.u32 %v186_v33, 16  ;;  %v580_v44 = vshrl.u32 %v186_v33, 16 }
  0x2e   : > { %v462_v25 = vpack.c.b16 %v457_v24, %v456_v23  ;;  %v446_v29 = vsel %vm1373_vm7, %v1094_v13, %v445_v11  ;;  %v643_v39 = vrot.slane %v641_v35, 4  ;;  %v586_v59 = vshll.u32 %v187_v34, 16 }
  0x2f   : > { %1070 = vmatmul.msk.bf16.gmra.mxu2 %vm305_vm1, %v1379_v54  ;;  %v458_v31 = vunpack.c.l.b16 %v446_v29  ;;  %v578_v49 = vrot.slane %v576_v43, 5  ;;  %v582_v50 = vrot.slane %v580_v44, 4  ;;  %v748_v20 = vshll.u32 %v188_v6, 16 }
  0x30   : > { %v645_v46 = vsel %vm1373_vm7, %v643_v39, %v644_v40  ;;  %v588_v0 = vrot.slane %v586_v59, 5  ;;  %v754_v9 = vshll.u32 %v189_v7, 16  ;;  %v758_v15 = vshrl.u32 %v189_v7, 16  ;;  %v1179_v40 = vld [vmem:[%s1262_s28 + $0x3c] sm:$0xff] }
  0x31   : > { %v649_v53 = vunpack.c.l.b16 %v645_v46  ;;  %v583_v57 = vor.u32 %v582_v50, %v578_v49  ;;  %v750_v16 = vrot.slane %v748_v20, 5  ;;  %v764_v21 = vshll.u32 %v190_v18, 16 }
  0x32   : > { %1068 = vmatmul.msk.bf16.gmra.mxu0 %vm305_vm1, %v302_v4  ;;  %v756_v19 = vrot.slane %v754_v9, 5  ;;  %v760_v17 = vrot.slane %v758_v15, 4  ;;  %v819_v29 = vrot.slane %v189_v7, 5  ;;  %v822_v37 = vrot.slane %v190_v18, 5 }
  0x33   : > { %1105 = vmatmul.msk.bf16.vlgmr.msrb.gmra.mxu3 %vm305_vm1, %v1175_v28  ;;  %1116 = vmatmul.msk.bf16.vlgmr.msrb.gmra.mxu1 %vm305_vm1, %v461_v8  ;;  %v448_v28 = vrot.slane %v1319_v52, 5  ;;  %v185_v52 = vld [vmem:[%s1262_s28 + $0x30] sm:$0xf]  ;;  %v584_v62 = vrot.slane %v583_v57, 4  ;;  %s1064_s28 = sshll.u32 %s1233_s13, 3 }
  0x34   : > { %v1114_v38 = vrot.slane %v185_v52, 9  ;;  %v567_v41 = vshrl.u32 %v185_v52, 16  ;;  %v570_v42 = vshll.u32 %v185_v52, 16  ;;  %p167_p4 = scmp.lt.s32.totalorder %s1064_s28, 63 }
  0x35   : > { %v449_v30 = vsel %vm1373_vm7, %v447_v27, %v448_v28  ;;  %v589_v2 = vsel %vm1307_vm4, %v584_v62, %v588_v0  ;;  %v1185_v0 = vld [vmem:[%s1557_s2 + $0x28] sm:$0xff] }
  0x36   : > { %v459_v32 = vunpack.c.l.b16 %v449_v30  ;;  %v642_v45 = vsel %vm1373_vm7, %v1114_v38, %v641_v35  ;;  %v569_v47 = vrot.slane %v567_v41, 4  ;;  %v572_v48 = vrot.slane %v570_v42, 5  ;;  %s1564_s28 = smov (!%p167_p4, %s1064_s28), 63 }
  0x37   : > { %v648_v51 = vunpack.c.l.b16 %v642_v45  ;;  %s1065_s29 = sshll.u32 %s1564_s28, 2 }
  0x38   : > { %v463_v36 = vpack.c.b16 %v459_v32, %v458_v31  ;;  %v573_v56 = vor.u32 %v572_v48, %v569_v47  ;;  %v1134_v32 = vrot.slane %v188_v6, 9  ;;  %s1534_s5 = scalar_lea.vmem %s1558_s3, %s1065_s29 }
  0x39   : > { %v650_v60 = vpack.c.b16 %v649_v53, %v648_v51 }
  0x3a   : > { %v574_v61 = vrot.slane %v573_v56, 4  ;;  %v820_v52 = vsel %vm1373_vm7, %v1134_v32, %v819_v29 }
  0x3b   : > { %v826_v41 = vunpack.c.l.b16 %v820_v52 }
  0x3c   : > { %v579_v1 = vsel %vm1307_vm4, %v574_v61, %v578_v49 }
  0x3d   : > { %v592_v3 = vunpack.c.l.b16 %v579_v1 }
  0x3f   : > { %1096 = vmatmul.msk.bf16.vlgmr.msrb.gmra.mxu2 %vm305_vm1, %v460_v22  ;;  %v766_v22 = vrot.slane %v764_v21, 5  ;;  %v1182_v21 = vld [vmem:[%s1557_s2 + $0x10] sm:$0xff] }
  0x42   : > { %1110 = vmatmul.msk.bf16.vlgmr.msrb.gmra.mxu0 %vm305_vm1, %v302_v4  ;;  %v593_v4 = vunpack.c.l.b16 %v589_v2 }
  0x43   : > { %1106 = vmatmul.msk.bf16.gmra.mxu3 %vm305_vm1, %v1265_v10  ;;  %1117 = vmatmul.msk.bf16.gmra.mxu1 %vm305_vm1, %v462_v25 }
  0x44   : > { %v594_v5 = vpack.c.b16 %v593_v4, %v592_v3 }
  0x4f   : > { %1097 = vmatmul.msk.bf16.gmra.mxu2 %vm305_vm1, %v461_v8  ;;  %v745_v8 = vshrl.u32 %v188_v6, 16  ;;  %v1184_v6 = vld [vmem:[%s1557_s2 + $0x20] sm:$0xff] }
  0x51   : > { %v747_v26 = vrot.slane %v745_v8, 4 }
  0x52   : > { %1111 = vmatmul.msk.bf16.gmra.mxu0 %vm305_vm1, %v1325_v63 }
  0x53   : > { %1107 = vmatmul.msk.bf16.gmra.mxu3 %vm305_vm1, %v1338_v14  ;;  %1118 = vmatmul.msk.bf16.gmra.mxu1 %vm305_vm1, %v463_v36 }
  0x5f   : > { %1098 = vmatmul.msk.bf16.gmra.mxu2 %vm305_vm1, %v462_v25 }
  0x62   : > { %1112 = vmatmul.msk.bf16.gmra.mxu0 %vm305_vm1, %v1379_v54 }
  0x63   : > { %1108 = vmatmul.msk.bf16.gmra.mxu3 %vm305_vm1, %v1178_v55  ;;  %1119 = vmatmul.msk.bf16.gmra.mxu1 %vm305_vm1, %v650_v60 }
  0x6f   : > { %1099 = vmatmul.msk.bf16.gmra.mxu2 %vm305_vm1, %v463_v36 }
  0x72   : > { %1113 = vmatmul.msk.bf16.gmra.mxu0 %vm305_vm1, %v594_v5 }
  0x73   : > { %1130 = vmatmul.msk.bf16.vlgmr.msra.gmra.mxu3 %vm305_vm1, %v1325_v63  ;;  %v761_v63 = vor.u32 %v760_v17, %v756_v19 }
  0x75   : > { %v762_v12 = vrot.slane %v761_v63, 4 }
  0x7f   : > { %1125 = vmatmul.msk.bf16.vlgmr.msra.gmra.mxu2 %vm305_vm1, %v1265_v10  ;;  %v751_v10 = vor.u32 %v750_v16, %v747_v26 }
  0x82   : > { %1136 = vmatmul.msk.bf16.vlgmr.msra.gmra.mxu0 %vm305_vm1, %v462_v25  ;;  %v767_v25 = vsel %vm1307_vm4, %v762_v12, %v766_v22 }
  0x83   : > { %1131 = vmatmul.msk.bf16.gmra.mxu3 %vm305_vm1, %v1379_v54  ;;  %v752_v54 = vrot.slane %v751_v10, 4  ;;  %v771_v13 = vunpack.c.l.b16 %v767_v25 }
  0x85   : > { %v757_v24 = vsel %vm1307_vm4, %v752_v54, %v756_v19  ;;  %v1183_v19 = vld [vmem:[%s1557_s2 + $0x18] sm:$0xff] }
  0x86   : > { %v770_v11 = vunpack.c.l.b16 %v757_v24 }
  0x88   : > { %v772_v27 = vpack.c.b16 %v771_v13, %v770_v11 }
  0x8f   : > { %1126 = vmatmul.msk.bf16.gmra.mxu2 %vm305_vm1, %v1338_v14 }
  0x90   : > { %v395_v53 = vpop.f32.mrf.mxu1 }
  0x92   : > { %1137 = vmatmul.msk.bf16.gmra.mxu0 %vm305_vm1, %v463_v36  ;;  %v821_v36 = vrot.slane %v819_v29, 4 }
  0x93   : > { %1132 = vmatmul.msk.bf16.gmra.mxu3 %vm305_vm1, %v594_v5 }
  0x94   : > { %v823_v34 = vsel %vm1373_vm7, %v821_v36, %v822_v37 }
  0x95   : > { %v827_v42 = vunpack.c.l.b16 %v823_v34 }
  0x96   : > { %v405_v23 = vpop.f32.mrf.mxu3 }
  0x97   : > { %v828_v44 = vpack.c.b16 %v827_v42, %v826_v41 }
  0x98   : > { %v397_v1 = vpop.f32.mrf.mxu1 }
  0x9e   : > { %v407_v14 = vpop.f32.mrf.mxu3 }
  0x9f   : > { %1127 = vmatmul.msk.bf16.gmra.mxu2 %vm305_vm1, %v1178_v55  ;;  %v331_v28 = vpop.f32.mrf.mxu0  ;;  %v1186_v55 = vld [vmem:[%s1557_s2 + $0x30] sm:$0xff] }
  0xa0   : > { %949 = vmatpush.bf16.msra.mxu1 %v1186_v55  ;;  %v396_v59 = vadd.f32 %v395_v53, %v331_v28  ;;  %v400_v8 = vpop.f32.mrf.mxu1 }
  0xa2   : > { %v341_v30 = vpop.f32.mrf.mxu2  ;;  %1138 = vmatmul.msk.bf16.gmra.mxu0 %vm305_vm1, %v650_v60 }
  0xa3   : > { %v1459_v31 = vadd.f32 %v405_v23, %v341_v30  ;;  %1133 = vmatmul.msk.bf16.gmra.mxu3 %vm305_vm1, %v772_v27  ;;  %v1181_v27 = vld [vmem:[%s1557_s2 + $0x8] sm:$0xff] }
  0xa4   : > { %950 = vmatpush.bf16.msra.mxu1 %v1185_v0 }
  0xa6   : > { %v410_v33 = vpop.f32.mrf.mxu3 }
  0xa7   : > { %v1462_v35 = vpop.f32.mrf.mxu0 }
  0xa8   : > { %951 = vmatpush.bf16.msra.mxu1 %v1184_v6  ;;  %v402_v13 = vpop.f32.mrf.mxu1  ;;  %v398_v42 = vadd.f32 %v397_v1, %v1462_v35 }
  0xaa   : > { %v343_v38 = vpop.f32.mrf.mxu2 }
  0xab   : > { %v1468_v39 = vadd.f32 %v407_v14, %v343_v38 }
  0xac   : > { %952 = vmatpush.bf16.msra.mxu1 %v1183_v19 }
  0xae   : > { %v412_v43 = vpop.f32.mrf.mxu3 }
  0xaf   : > { %1128 = vmatmul.msk.bf16.gmra.mxu2 %vm305_vm1, %v1179_v40  ;;  %v336_v45 = vpop.f32.mrf.mxu0 }
  0xb0   : > { %v401_v9 = vadd.f32 %v400_v8, %v336_v45  ;;  %953 = vmatpush.bf16.msra.mxu1 %v1182_v21  ;;  %v666_v30 = vpop.f32.mrf.mxu1 }
  0xb2   : > { %v346_v46 = vpop.f32.mrf.mxu2  ;;  %1139 = vmatmul.msk.bf16.gmra.mxu0 %vm305_vm1, %v828_v44 }
  0xb3   : > { %v411_v47 = vadd.f32 %v410_v33, %v346_v46 }
  0xb4   : > { %954 = vmatpush.bf16.msra.mxu1 %v1181_v27 }
  0xb6   : > { %v538_v48 = vpop.f32.mrf.mxu3 }
  0xb7   : > { %v1476_v49 = vpop.f32.mrf.mxu0 }
  0xb8   : > { %v668_v40 = vpop.f32.mrf.mxu1 }
  0xba   : > { %v348_v50 = vpop.f32.mrf.mxu2 }
  0xbb   : > { %v1478_v51 = vadd.f32 %v412_v43, %v348_v50 }
  0xbe   : > { %v540_v56 = vpop.f32.mrf.mxu3 }
  0xbf   : > { %v610_v57 = vpop.f32.mrf.mxu0 }
  0xc0   : > { %v671_v50 = vpop.f32.mrf.mxu1 }
  0xc2   : > { %v488_v60 = vpop.f32.mrf.mxu2 }
  0xc3   : > { %v508_v61 = vadd.f32 %v488_v60, %v396_v59 }
  0xc5   : > { %v558_v62 = vadd.f32 %v538_v48, %v508_v61 }
  0xc6   : > { %v543_v2 = vpop.f32.mrf.mxu3 }
  0xc7   : > { %v630_v3 = vadd.f32 %v610_v57, %v558_v62  ;;  %v612_v4 = vpop.f32.mrf.mxu0  ;;  %v403_v62 = vadd.f32 %v402_v13, %v1476_v49 }
  0xc8   : > { %v673_v1 = vpop.f32.mrf.mxu1 }
  0xc9   : > { %v686_v48 = vadd.f32 %v666_v30, %v630_v3 }
  0xca   : > { %v490_v5 = vpop.f32.mrf.mxu2 }
  0xcb   : > { %v509_v43 = vadd.f32 %v490_v5, %v398_v42 }
  0xcd   : > { %v559_v46 = vadd.f32 %v540_v56, %v509_v43 }
  0xce   : > { %v1489_v7 = vpop.f32.mrf.mxu3 }
  0xcf   : > { %v615_v20 = vpop.f32.mrf.mxu0 }
  0xd2   : > { %v493_v15 = vpop.f32.mrf.mxu2 }
  0xd3   : > { %v510_v26 = vadd.f32 %v493_v15, %v401_v9 }
  0xd5   : > { %v560_v16 = vadd.f32 %v543_v2, %v510_v26 }
  0xd6   : > { %v548_v17 = vpop.f32.mrf.mxu3 }
  0xd7   : > { %v632_v18 = vadd.f32 %v615_v20, %v560_v16  ;;  %v617_v10 = vpop.f32.mrf.mxu0 }
  0xd9   : > { %v688_v9 = vadd.f32 %v671_v50, %v632_v18 }
  0xda   : > { %v495_v63 = vpop.f32.mrf.mxu2 }
  0xdb   : > { %v511_v2 = vadd.f32 %v495_v63, %v403_v62 }
  0xdd   : > { %v561_v56 = vadd.f32 %v1489_v7, %v511_v2 }
  0xde   : > { %v1497_v54 = vpop.f32.mrf.mxu3 }
  0xdf   : > { %v620_v12 = vpop.f32.mrf.mxu0  ;;  %v633_v16 = vadd.f32 %v617_v10, %v561_v56 }
  0xe1   : > { %v689_v21 = vadd.f32 %v673_v1, %v633_v16 }
  0xe2   : > { %v498_v22 = vpop.f32.mrf.mxu2 }
  0xe3   : > { %v512_v23 = vadd.f32 %v498_v22, %v1459_v31  ;;  %v1180_v31 = vld [vmem:[%s1557_s2] sm:$0xff] }
  0xe4   : > { %955 = vmatpush.bf16.msra.mxu1 %v1180_v31 }
  0xe5   : > { %v562_v24 = vadd.f32 %v548_v17, %v512_v23  ;;  %v676_v17 = vpop.f32.mrf.mxu1 }
  0xe6   : > { %v553_v25 = vpop.f32.mrf.mxu3 }
  0xe7   : > { %v1500_v11 = vadd.f32 %v620_v12, %v562_v24  ;;  %v1502_v14 = vpop.f32.mrf.mxu0 }
  0xe9   : > { %v690_v31 = vadd.f32 %v676_v17, %v1500_v11 }
  0xea   : > { %v500_v28 = vpop.f32.mrf.mxu2 }
  0xeb   : > { %v513_v23 = vadd.f32 %v500_v28, %v1468_v39 }
  0xed   : > { %v563_v18 = vadd.f32 %v1497_v54, %v513_v23  ;;  %v678_v10 = vpop.f32.mrf.mxu1 }
  0xee   : > { %v1507_v29 = vpop.f32.mrf.mxu3 }
  0xef   : > { %v625_v32 = vpop.f32.mrf.mxu0 }
  0xf2   : > { %v503_v36 = vpop.f32.mrf.mxu2 }
  0xf3   : > { %v514_v37 = vadd.f32 %v503_v36, %v411_v47  ;;  %v631_v47 = vadd.f32 %v612_v4, %v559_v46 }
  0xf5   : > { %v564_v33 = vadd.f32 %v553_v25, %v514_v37  ;;  %v687_v57 = vadd.f32 %v668_v40, %v631_v47 }
  0xf6   : > { %v788_v52 = vpop.f32.mrf.mxu3 }
  0xf7   : > { %v1512_v34 = vadd.f32 %v625_v32, %v564_v33  ;;  %v1514_v38 = vpop.f32.mrf.mxu0  ;;  %v635_v33 = vadd.f32 %v1502_v14, %v563_v18 }
  0xf9   : > { %v691_v39 = vadd.f32 %v678_v10, %v635_v33 }
  0xfa   : > { %v1516_v41 = vpop.f32.mrf.mxu2 }
  0xfb   : > { %v515_v54 = vadd.f32 %v1516_v41, %v1478_v51 }
  0xfd   : > { %v565_v11 = vadd.f32 %v1507_v29, %v515_v54 }
  0xfe   : > { %v790_v45 = vpop.f32.mrf.mxu3 }
  0xff   : > { %v844_v44 = vpop.f32.mrf.mxu0 }
 0x102   : > { %v716_v58 = vpop.f32.mrf.mxu2 }
 0x103   : > { %v736_v53 = vadd.f32 %v716_v58, %v686_v48 }
 0x105   : > { %v808_v59 = vadd.f32 %v788_v52, %v736_v53 }
 0x106   : > { %v793_v61 = vpop.f32.mrf.mxu3 }
 0x107   : > { %v846_v55 = vpop.f32.mrf.mxu0  ;;  %v864_v6 = vadd.f32 %v844_v44, %v808_v59 }
 0x109   : > { %v872_v3 = vmax.f32 %v864_v6, 0.0 }
 0x10a   : > { %v718_v60 = vpop.f32.mrf.mxu2 }
 0x10b   : > { %v737_v0 = vadd.f32 %v718_v60, %v687_v57  ;;  %v637_v60 = vadd.f32 %v1514_v38, %v565_v11 }
 0x10d   : > { %v809_v35 = vadd.f32 %v790_v45, %v737_v0  ;;  %v681_v45 = vpop.f32.mrf.mxu1 }
 0x10e   : > { %v795_v26 = vpop.f32.mrf.mxu3 }
 0x10f   : > { %v865_v5 = vadd.f32 %v846_v55, %v809_v35  ;;  %v849_v8 = vpop.f32.mrf.mxu0  ;;  %v692_v55 = vadd.f32 %v681_v45, %v1512_v34 }
 0x111   : > { %v873_v20 = vmax.f32 %v865_v5, 0.0 }
 0x112   : > { %v721_v4 = vpop.f32.mrf.mxu2 }
 0x113   : > { %v880_v15 = vpack.c.bf16 %v873_v20, %v872_v3  ;;  %v738_v19 = vadd.f32 %v721_v4, %v688_v9 }
 0x115   : > { %956 = vmatmul.bf16.vlgmr.msra.gmra.mxu1 %v880_v15  ;;  %v810_v63 = vadd.f32 %v793_v61, %v738_v19  ;;  %v683_v62 = vpop.f32.mrf.mxu1 }
 0x116   : > { %v798_v7 = vpop.f32.mrf.mxu3  ;;  %v693_v51 = vadd.f32 %v683_v62, %v637_v60 }
 0x117   : > { %v851_v49 = vpop.f32.mrf.mxu0  ;;  %v866_v25 = vadd.f32 %v849_v8, %v810_v63 }
 0x119   : > { %v874_v30 = vmax.f32 %v866_v25, 0.0 }
 0x11a   : > { %v723_v12 = vpop.f32.mrf.mxu2 }
 0x11b   : > { %v739_v22 = vadd.f32 %v723_v12, %v689_v21 }
 0x11d   : > { %v811_v24 = vadd.f32 %v795_v26, %v739_v22 }
 0x11e   : > { %v800_v40 = vpop.f32.mrf.mxu3 }
 0x11f   : > { %v867_v13 = vadd.f32 %v851_v49, %v811_v24  ;;  %v854_v27 = vpop.f32.mrf.mxu0 }
 0x121   : > { %v875_v32 = vmax.f32 %v867_v13, 0.0 }
 0x122   : > { %v726_v36 = vpop.f32.mrf.mxu2 }
 0x123   : > { %v881_v37 = vpack.c.bf16 %v875_v32, %v874_v30  ;;  %v740_v52 = vadd.f32 %v726_v36, %v690_v31 }
 0x125   : > { %961 = vmatmul.bf16.gmra.mxu1 %v881_v37  ;;  %v812_v28 = vadd.f32 %v798_v7, %v740_v52 }
 0x126   : > { %v803_v14 = vpop.f32.mrf.mxu3 }
 0x127   : > { %v856_v42 = vpop.f32.mrf.mxu0  ;;  %v868_v58 = vadd.f32 %v854_v27, %v812_v28 }
 0x129   : > { %v876_v50 = vmax.f32 %v868_v58, 0.0 }
 0x12a   : > { %v728_v43 = vpop.f32.mrf.mxu2 }
 0x12b   : > { %v741_v44 = vadd.f32 %v728_v43, %v691_v39 }
 0x12d   : > { %v813_v46 = vadd.f32 %v800_v40, %v741_v44 }
 0x12e   : > { %v805_v6 = vpop.f32.mrf.mxu3 }
 0x12f   : > { %v869_v48 = vadd.f32 %v856_v42, %v813_v46  ;;  %v859_v59 = vpop.f32.mrf.mxu0 }
 0x131   : > { %v877_v47 = vmax.f32 %v869_v48, 0.0 }
 0x132   : > { %v731_v53 = vpop.f32.mrf.mxu2 }
 0x133   : > { %v882_v57 = vpack.c.bf16 %v877_v47, %v876_v50  ;;  %v742_v61 = vadd.f32 %v731_v53, %v692_v55 }
 0x135   : > { %966 = vmatmul.bf16.gmra.mxu1 %v882_v57  ;;  %v814_v41 = vadd.f32 %v803_v14, %v742_v61 }
 0x137   : > { %v870_v35 = vadd.f32 %v859_v59, %v814_v41  ;;  %v861_v1 = vpop.f32.mrf.mxu0 }
 0x139   : > { %v878_v8 = vmax.f32 %v870_v35, 0.0 }
 0x13a   : > { %v733_v0 = vpop.f32.mrf.mxu2 }
 0x13b   : > { %v743_v2 = vadd.f32 %v733_v0, %v693_v51 }
 0x13d   : > { %v815_v29 = vadd.f32 %v805_v6, %v743_v2 }
 0x13f   : > { %v871_v5 = vadd.f32 %v861_v1, %v815_v29 }
 0x141   : > { %v879_v56 = vmax.f32 %v871_v5, 0.0 }
 0x143   : > { %v883_v34 = vpack.c.bf16 %v879_v56, %v878_v8 }
 0x145   : > { %971 = vmatmul.bf16.gmra.mxu1 %v883_v34 }
 0x192   : > { %v957_v38 = vpop.f32.mrf.mxu1 }
 0x193   : > { %v977_v3 = vmax.f32 %v957_v38, 0.0 }
 0x195   : > { %v985_v20 = vpack.c.bf16 %v977_v3, %v977_v3 }
 0x197   : > { %994 = vst.msk [vmem:[%s1534_s5] sm:$0xf] %vm993_vm8, %v985_v20 }
 0x19a   : > { %v959_v4 = vpop.f32.mrf.mxu1 }
 0x19b   : > { %v978_v9 = vmax.f32 %v959_v4, 0.0 }
 0x19d   : > { %v986_v15 = vpack.c.bf16 %v978_v9, %v978_v9 }
 0x19f   : > { %995 = vst.msk [vmem:[%s1534_s5 + $0x4] sm:$0xf] %vm993_vm8, %v986_v15 }
 0x1a2   : > { %v962_v26 = vpop.f32.mrf.mxu1 }
 0x1a3   : > { %v979_v16 = vmax.f32 %v962_v26, 0.0 }
 0x1a5   : > { %v987_v19 = vpack.c.bf16 %v979_v16, %v979_v16 }
 0x1a7   : > { %996 = vst.msk [vmem:[%s1534_s5 + $0x8] sm:$0xf] %vm993_vm8, %v987_v19 }
 0x1aa   : > { %v964_v17 = vpop.f32.mrf.mxu1 }
 0x1ab   : > { %v980_v49 = vmax.f32 %v964_v17, 0.0 }
 0x1ad   : > { %v988_v21 = vpack.c.bf16 %v980_v49, %v980_v49 }
 0x1af   : > { %997 = vst.msk [vmem:[%s1534_s5 + $0xc] sm:$0xf] %vm993_vm8, %v988_v21 }
 0x1b2   : > { %v967_v63 = vpop.f32.mrf.mxu1 }
 0x1b3   : > { %v981_v12 = vmax.f32 %v967_v63, 0.0 }
 0x1b5   : > { %v989_v22 = vpack.c.bf16 %v981_v12, %v981_v12 }
 0x1b7   : > { %998 = vst.msk [vmem:[%s1534_s5 + $0x10] sm:$0xf] %vm993_vm8, %v989_v22 }
 0x1ba   : > { %v969_v23 = vpop.f32.mrf.mxu1 }
 0x1bb   : > { %v982_v24 = vmax.f32 %v969_v23, 0.0 }
 0x1bd   : > { %v990_v25 = vpack.c.bf16 %v982_v24, %v982_v24 }
 0x1bf   : > { %999 = vst.msk [vmem:[%s1534_s5 + $0x14] sm:$0xf] %vm993_vm8, %v990_v25 }
 0x1c2   : > { %v972_v7 = vpop.f32.mrf.mxu1 }
 0x1c3   : > { %v983_v13 = vmax.f32 %v972_v7, 0.0 }
 0x1c5   : > { %v991_v27 = vpack.c.bf16 %v983_v13, %v983_v13 }
 0x1c7   : > { %1000 = vst.msk [vmem:[%s1534_s5 + $0x18] sm:$0xf] %vm993_vm8, %v991_v27 }
 0x1ca   : > { %v974_v18 = vpop.f32.mrf.mxu1 }
 0x1cb   : > { %v984_v30 = vmax.f32 %v974_v18, 0.0 }
 0x1cd   : > { %v992_v32 = vpack.c.bf16 %v984_v30, %v984_v30 }
 0x1cf   : > { %1001 = vst.msk [vmem:[%s1534_s5 + $0x1c] sm:$0xf] %vm993_vm8, %v992_v32 }
 0x1d0 PF: > { %s13_s12 = sadd.s32 1, %s1205_s12  }
 0x1d1   : > { %p10_p5 = scmp.ge.s32.totalorder %s13_s12, 10  }
 0x1d3   :  { %12 = sbr.rel (!%p10_p5) target bundleno = 1 (0x1), region = 70 }

</bundles_post_ra>
